<compile_context>
chip_gen: v5e
topology: v5e:2x2
jax: 0.10.0
libtpu: 0.0.40
codegen_flags: <defaults>
</compile_context>

<pallas_src>
import functools
import math

import jax
import jax.numpy as jnp
from jax.experimental import pallas as pl
from jax.experimental.pallas import tpu as pltpu


# --------------------------------------------------------------------------
# Fused attention kernel: QKV proj + LSH-masked softmax + PV + out proj
# --------------------------------------------------------------------------

def _fused_lsh_attn_kernel(q_ref, k_ref, v_ref, bias_ref,
                           wq_ref, wk_ref, wv_ref,
                           bq_ref, bk_ref, bv_ref,
                           woh_ref, bo_ref,
                           out_ref, attn_ref,
                           qh_s, kh_s, vh_s, *,
                           num_heads, head_dim, scale, attn_dtype):
    """Grid = (B, T, H); one head of one (b, t) tile per step.

    At h == 0 the full Q/K/V projections for the tile are computed once (full-width
    (N,D)@(D,D) MXU matmuls) and split into per-head bf16 VMEM scratch with STATIC
    lane slices.  Every step then runs one head's masked softmax-attention and
    accumulates its out-projection contribution into the resident output block.
    """
    h = pl.program_id(2)

    @pl.when(h == 0)
    def _project_all_heads():
        xq = q_ref[0, 0]                                    # (N, D) f32
        xk = k_ref[0, 0]                                    # (Ns, D)
        xv = v_ref[0, 0]
        # NOTE: q/k/v inputs may differ (cross-attention), so the weights cannot be
        # packed into one (D, 3D) matmul without changing semantics.
        qp = (jnp.dot(xq, wq_ref[...], preferred_element_type=jnp.float32)
              + bq_ref[...]) * scale                        # fold 1/sqrt(hd) into q
        kp = jnp.dot(xk, wk_ref[...], preferred_element_type=jnp.float32) + bk_ref[...]
        vp = jnp.dot(xv, wv_ref[...], preferred_element_type=jnp.float32) + bv_ref[...]
        for hh in range(num_heads):                         # static lane slices
            lo = hh * head_dim
            hi = lo + head_dim
            qh_s[hh] = qp[:, lo:hi].astype(jnp.bfloat16)    # bf16 MXU operands
            kh_s[hh] = kp[:, lo:hi].astype(jnp.bfloat16)
            vh_s[hh] = vp[:, lo:hi].astype(jnp.bfloat16)

    qh = qh_s[h]                                            # (N,  hd) bf16
    kh = kh_s[h]                                            # (Ns, hd) bf16
    vh = vh_s[h]                                            # (Ns, hd) bf16

    # q_h @ k_h^T (bf16 operands, f32 accumulate) + additive LSH bias.
    # bias is -1e30 on dropped pairs: exp underflows to exactly 0 (no NaN).  The
    # 1%-quantile band always keeps the diagonal, so a row is never fully masked
    # (the torch reference would NaN in that case; here it would go uniform).
    s = jax.lax.dot_general(qh, kh, (((1,), (1,)), ((), ())),
                            preferred_element_type=jnp.float32) + bias_ref[0]
    mx = jnp.max(s, axis=-1, keepdims=True)
    e = jnp.exp(s - mx)
    denom = jnp.sum(e, axis=-1, keepdims=True)
    p = e * (1.0 / denom)          # exact reciprocal: stored probs sum to 1 like torch
    attn_ref[0, 0, 0] = p.astype(attn_dtype)                # bf16 writeback (dominant stream)

    pv = jnp.dot(p.astype(jnp.bfloat16), vh,
                 preferred_element_type=jnp.float32)        # (N, hd) f32
    # Fused output projection: out = sum_h pv_h @ Wo[h*hd:(h+1)*hd, :] + bo
    contrib = jnp.dot(pv, woh_ref[0], preferred_element_type=jnp.float32)  # (N, D)

    @pl.when(h == 0)
    def _init_out():
        out_ref[0, 0] = contrib + bo_ref[...]

    @pl.when(h != 0)
    def _acc_out():
        out_ref[0, 0] += contrib


def _attn_vmem_limit_bytes(N, Ns, D, H, hd):
    """Explicit scoped-VMEM budget (double-buffered blocks + scratch + headroom)."""
    def rnd(x, m):
        return ((max(x, 1) + m - 1) // m) * m
    f32, bf16 = 4, 2
    b = 0
    b += 2 * rnd(N, 8) * rnd(D, 128) * f32                    # q tile
    b += 2 * 2 * rnd(Ns, 8) * rnd(D, 128) * f32               # k, v tiles
    b += 2 * rnd(N, 8) * rnd(Ns, 128) * f32                   # bias
    b += 2 * 3 * rnd(D, 8) * rnd(D, 128) * f32                # wq, wk, wv
    b += 2 * 4 * rnd(1, 8) * rnd(D, 128) * f32                # bq, bk, bv, bo
    b += 2 * rnd(hd, 8) * rnd(D, 128) * f32                   # wo head slice
    b += 2 * rnd(N, 8) * rnd(D, 128) * f32                    # out block
    b += 2 * rnd(N, 8) * rnd(Ns, 128) * bf16                  # attn block
    b += H * (rnd(N, 8) + 2 * rnd(Ns, 8)) * rnd(hd, 128) * bf16   # scratches
    b += 6 * rnd(N, 8) * rnd(Ns, 128) * f32                   # score/exp intermediates
    return int(min(64 * 2**20, max(16 * 2**20, 2 * b)))       # <= 64 MiB (v7x physical)


def pallas_lsh_attention(query, key, value, bias, params, num_heads,
                         attn_dtype=jnp.bfloat16):
    """query: (B,T,N,D); key/value: (B,T,Ns,D); bias: (B,N,Ns) additive f32.
    Returns out (B,T,N,D) f32 and attn (H,B,T,N,Ns) in attn_dtype."""
    B, T, N, D = query.shape
    Ns = key.shape[2]
    head_dim = D // num_heads
    scale = 1.0 / math.sqrt(head_dim)

    woh = params["wo"].reshape(num_heads, head_dim, D)     # per-head rows of Wo
    bq = params["bq"].reshape(1, D)
    bk = params["bk"].reshape(1, D)
    bv = params["bv"].reshape(1, D)
    bo = params["bo"].reshape(1, D)

    kernel = functools.partial(
        _fused_lsh_attn_kernel, num_heads=num_heads, head_dim=head_dim,
        scale=scale, attn_dtype=attn_dtype)

    out, attn = pl.pallas_call(
        kernel,
        out_shape=(
            jax.ShapeDtypeStruct((B, T, N, D), jnp.float32),
            jax.ShapeDtypeStruct((num_heads, B, T, N, Ns), attn_dtype),
        ),
        grid=(B, T, num_heads),
        in_specs=[
            # activations: same block across h -> no re-DMA per head
            pl.BlockSpec((1, 1, N, D), lambda b, t, h: (b, t, 0, 0)),
            pl.BlockSpec((1, 1, Ns, D), lambda b, t, h: (b, t, 0, 0)),
            pl.BlockSpec((1, 1, Ns, D), lambda b, t, h: (b, t, 0, 0)),
            # LSH bias deduped across heads AND time steps
            pl.BlockSpec((1, N, Ns), lambda b, t, h: (b, 0, 0)),
            # projection weights / biases (constant blocks)
            pl.BlockSpec((D, D), lambda b, t, h: (0, 0)),
            pl.BlockSpec((D, D), lambda b, t, h: (0, 0)),
            pl.BlockSpec((D, D), lambda b, t, h: (0, 0)),
            pl.BlockSpec((1, D), lambda b, t, h: (0, 0)),
            pl.BlockSpec((1, D), lambda b, t, h: (0, 0)),
            pl.BlockSpec((1, D), lambda b, t, h: (0, 0)),
            # per-head slice of the output-projection weight
            pl.BlockSpec((1, head_dim, D), lambda b, t, h: (h, 0, 0)),
            pl.BlockSpec((1, D), lambda b, t, h: (0, 0)),
        ],
        out_specs=(
            # out block resident across h (accumulator) -> ONE lane-dense store per (b,t)
            pl.BlockSpec((1, 1, N, D), lambda b, t, h: (b, t, 0, 0)),
            pl.BlockSpec((1, 1, 1, N, Ns), lambda b, t, h: (h, b, t, 0, 0)),
        ),
        scratch_shapes=[
            pltpu.VMEM((num_heads, N, head_dim), jnp.bfloat16),
            pltpu.VMEM((num_heads, Ns, head_dim), jnp.bfloat16),
            pltpu.VMEM((num_heads, Ns, head_dim), jnp.bfloat16),
        ],
        compiler_params=pltpu.CompilerParams(
            dimension_semantics=("parallel", "parallel", "arbitrary"),
            vmem_limit_bytes=_attn_vmem_limit_bytes(N, Ns, D, num_heads, head_dim)),
    )(query, key, value, bias,
      params["wq"], params["wk"], params["wv"],
      bq, bk, bv, woh, bo)
    return out, attn


# --------------------------------------------------------------------------
# LSH mask (plain-JAX glue: quantile requires a sort, no Pallas equivalent)
# --------------------------------------------------------------------------

def lsh_mask_bool(x, target_length,
                  congest_speed_threshold=-0.2260138304488262):
    """x: (B, N, L) -> bool keep-mask (B, N, target_length). No head/time tiling."""
    B, N, _ = x.shape
    # torch.cdist(x, x, p=1)
    dist = jnp.sum(jnp.abs(x[:, :, None, :] - x[:, None, :, :]), axis=-1)  # (B,N,N)

    qs = jnp.array(
        [0.01, 0.1, 0.11, 0.2, 0.21, 0.3, 0.31, 0.4, 0.41, 0.5, 0.51,
         0.6, 0.61, 0.7, 0.71, 0.8, 0.81, 0.9, 0.91],
        dtype=jnp.float32,
    )
    quants = jnp.quantile(dist, qs, axis=-1)   # (19, B, N), linear interp (torch default)

    mask = dist <= quants[0][..., None]                        # min_mask
    for band in range(9):                                      # mask_2 .. mask_10
        lo = quants[1 + 2 * band][..., None]
        hi = quants[2 + 2 * band][..., None]
        mask = mask | ((dist >= lo) & (dist <= hi))

    x_mean = jnp.mean(x, axis=-1)                              # (B, N)
    mask = mask | (x_mean[:, None, :] <= congest_speed_threshold)

    if target_length > N:
        pad = jnp.ones((B, N, target_length - N), dtype=bool)
        mask = jnp.concatenate([mask, pad], axis=-1)
    return mask


def lsh_bias(x, target_length):
    """Additive bias form of the LSH mask: 0.0 keep / -1e30 drop, f32, (B, N, target).
    Kept f32 so the kernel never re-casts it (its DMA is deduped across h and t)."""
    mask = lsh_mask_bool(x, target_length)
    return jnp.where(mask, 0.0, -1e30).astype(jnp.float32)


# --------------------------------------------------------------------------
# Forward pass (Pallas path)
# --------------------------------------------------------------------------

def lsh_attention_forward(params, query, key, value, x, num_heads,
                          attn_dtype=jnp.bfloat16):
    B, T, N, D = query.shape
    Ns = key.shape[2]

    bias = lsh_bias(x, Ns)                     # (B, N, Ns), shared across heads & time
    out, attn_h = pallas_lsh_attention(query, key, value, bias, params,
                                       num_heads, attn_dtype=attn_dtype)
    # (H, B, T, N, Ns) -> (H*B, T, N, Ns): head-major contiguous => free reshape,
    # matching torch.cat(torch.split(., head_dim, -1), 0) ordering (index = h*B + b).
    attn = attn_h.reshape(num_heads * B, T, N, Ns)
    return out, attn


# --------------------------------------------------------------------------
# Pure-JAX reference (torch semantics) for correctness check
# --------------------------------------------------------------------------

def reference_forward(params, query, key, value, x, num_heads):
    B, T, N, D = query.shape
    hd = D // num_heads
    q = query @ params["wq"] + params["bq"]
    k = key @ params["wk"] + params["bk"]
    v = value @ params["wv"] + params["bv"]

    def sh(t):
        return (t.reshape(B, T, N, num_heads, hd)
                 .transpose(3, 0, 1, 2, 4)
                 .reshape(num_heads * B, T, N, hd))

    qh, kh, vh = sh(q), sh(k), sh(v)
    s = jnp.einsum("btqd,btkd->btqk", qh, kh) / math.sqrt(hd)
    mask = lsh_mask_bool(x, N)                                 # (B, N, N)
    mask = jnp.tile(mask, (num_heads, 1, 1))[:, None]          # (H*B, 1, N, N)
    s = jnp.where(mask, s, -jnp.inf)
    p = jax.nn.softmax(s, axis=-1)
    o = jnp.einsum("btqk,btkd->btqd", p, vh)
    o = (o.reshape(num_heads, B, T, N, hd)
          .transpose(1, 2, 3, 0, 4)
          .reshape(B, T, N, D))
    o = o @ params["wo"] + params["bo"]
    return o, p


# --------------------------------------------------------------------------

if __name__ == "__main__":
    B, T, N, D, H = 2, 4, 8, 32, 8  # batch, in_steps, num_nodes, model_dim, heads

    key0 = jax.random.PRNGKey(0)
    ks = jax.random.split(key0, 13)

    params = {
        "wq": jax.random.normal(ks[0], (D, D), jnp.float32) * 0.1,
        "bq": jax.random.normal(ks[1], (D,), jnp.float32) * 0.01,
        "wk": jax.random.normal(ks[2], (D, D), jnp.float32) * 0.1,
        "bk": jax.random.normal(ks[3], (D,), jnp.float32) * 0.01,
        "wv": jax.random.normal(ks[4], (D, D), jnp.float32) * 0.1,
        "bv": jax.random.normal(ks[5], (D,), jnp.float32) * 0.01,
        "wo": jax.random.normal(ks[6], (D, D), jnp.float32) * 0.1,
        "bo": jax.random.normal(ks[7], (D,), jnp.float32) * 0.01,
    }

    query = jax.random.normal(ks[8], (B, T, N, D), jnp.float32)
    key_t = jax.random.normal(ks[9], (B, T, N, D), jnp.float32)
    value = jax.random.normal(ks[10], (B, T, N, D), jnp.float32)
    x = jax.random.normal(ks[11], (B, N, T), jnp.float32)  # seq_len == T

    fwd = jax.jit(functools.partial(lsh_attention_forward, num_heads=H))
    out, attn = fwd(params, query, key_t, value, x)
    jax.block_until_ready((out, attn))

    out_ref, attn_ref = reference_forward(params, query, key_t, value, x, H)
    assert out.shape == (B, T, N, D)
    assert attn.shape == (H * B, T, N, N)
    # bf16 attn storage + bf16 MXU operands => slightly looser tolerance than pure f32.
    assert jnp.allclose(out, out_ref, rtol=2e-2, atol=2e-2), "out mismatch"
    assert jnp.allclose(attn.astype(jnp.float32), attn_ref,
                        rtol=2e-2, atol=2e-2), "attn mismatch"

    print("KERNEL_OK")
</pallas_src>

<mosaic_0001>
module attributes {stable_mosaic.version = 11 : i64} {
  func.func @_fused_lsh_attn_kernel(%arg0: i32, %arg1: i32, %arg2: i32, %arg3: memref<1x1x8x32xf32, #tpu.memory_space<vmem>>, %arg4: memref<1x1x8x32xf32, #tpu.memory_space<vmem>>, %arg5: memref<1x1x8x32xf32, #tpu.memory_space<vmem>>, %arg6: memref<1x8x8xf32, #tpu.memory_space<vmem>>, %arg7: memref<32x32xf32, #tpu.memory_space<vmem>>, %arg8: memref<32x32xf32, #tpu.memory_space<vmem>>, %arg9: memref<32x32xf32, #tpu.memory_space<vmem>>, %arg10: memref<1x32xf32, #tpu.memory_space<vmem>>, %arg11: memref<1x32xf32, #tpu.memory_space<vmem>>, %arg12: memref<1x32xf32, #tpu.memory_space<vmem>>, %arg13: memref<1x4x32xf32, #tpu.memory_space<vmem>>, %arg14: memref<1x32xf32, #tpu.memory_space<vmem>>, %arg15: memref<1x1x8x32xf32, #tpu.memory_space<vmem>>, %arg16: memref<1x1x1x8x8xbf16, #tpu.memory_space<vmem>>, %arg17: memref<8x8x4xbf16, #tpu.memory_space<vmem>>, %arg18: memref<8x8x4xbf16, #tpu.memory_space<vmem>>, %arg19: memref<8x8x4xbf16, #tpu.memory_space<vmem>>) attributes {dimension_semantics = [#tpu.dimension_semantics<parallel>, #tpu.dimension_semantics<parallel>, #tpu.dimension_semantics<arbitrary>], iteration_bounds = array<i64: 2, 4, 8>, scalar_prefetch = 0 : i64, scratch_operands = 3 : i64, tpu.core_type = #tpu.core_type<tc>, window_params = [{transform_indices = @transform_0, window_bounds = array<i64: 1, 1, 8, 32>}, {transform_indices = @transform_1, window_bounds = array<i64: 1, 1, 8, 32>}, {transform_indices = @transform_2, window_bounds = array<i64: 1, 1, 8, 32>}, {transform_indices = @transform_3, window_bounds = array<i64: 1, 8, 8>}, {pipeline_mode = #tpu.pipeline_mode<synchronous>, transform_indices = @transform_4, window_bounds = array<i64: 32, 32>}, {pipeline_mode = #tpu.pipeline_mode<synchronous>, transform_indices = @transform_5, window_bounds = array<i64: 32, 32>}, {pipeline_mode = #tpu.pipeline_mode<synchronous>, transform_indices = @transform_6, window_bounds = array<i64: 32, 32>}, {pipeline_mode = #tpu.pipeline_mode<synchronous>, transform_indices = @transform_7, window_bounds = array<i64: 1, 32>}, {pipeline_mode = #tpu.pipeline_mode<synchronous>, transform_indices = @transform_8, window_bounds = array<i64: 1, 32>}, {pipeline_mode = #tpu.pipeline_mode<synchronous>, transform_indices = @transform_9, window_bounds = array<i64: 1, 32>}, {transform_indices = @transform_10, window_bounds = array<i64: 1, 4, 32>}, {pipeline_mode = #tpu.pipeline_mode<synchronous>, transform_indices = @transform_11, window_bounds = array<i64: 1, 32>}, {transform_indices = @transform_12, window_bounds = array<i64: 1, 1, 8, 32>}, {transform_indices = @transform_13, window_bounds = array<i64: 1, 1, 1, 8, 8>}]} {
    %c0_i32 = arith.constant 0 : i32
    %0 = arith.cmpi eq, %arg2, %c0_i32 : i32
    %1 = arith.extui %0 : i1 to i32
    %c0_i32_0 = arith.constant 0 : i32
    %2 = arith.cmpi ne, %1, %c0_i32_0 : i32
    scf.if %2 {
      %c0_26 = arith.constant 0 : index
      %c0_27 = arith.constant 0 : index
      %c0_28 = arith.constant 0 : index
      %c0_29 = arith.constant 0 : index
      %42 = vector.load %arg3[%c0_26, %c0_27, %c0_28, %c0_29] : memref<1x1x8x32xf32, #tpu.memory_space<vmem>>, vector<1x1x8x32xf32>
      %43 = vector.shape_cast %42 : vector<1x1x8x32xf32> to vector<8x32xf32>
      %c0_30 = arith.constant 0 : index
      %c0_31 = arith.constant 0 : index
      %c0_32 = arith.constant 0 : index
      %c0_33 = arith.constant 0 : index
      %44 = vector.load %arg4[%c0_30, %c0_31, %c0_32, %c0_33] : memref<1x1x8x32xf32, #tpu.memory_space<vmem>>, vector<1x1x8x32xf32>
      %45 = vector.shape_cast %44 : vector<1x1x8x32xf32> to vector<8x32xf32>
      %c0_34 = arith.constant 0 : index
      %c0_35 = arith.constant 0 : index
      %c0_36 = arith.constant 0 : index
      %c0_37 = arith.constant 0 : index
      %46 = vector.load %arg5[%c0_34, %c0_35, %c0_36, %c0_37] : memref<1x1x8x32xf32, #tpu.memory_space<vmem>>, vector<1x1x8x32xf32>
      %47 = vector.shape_cast %46 : vector<1x1x8x32xf32> to vector<8x32xf32>
      %c0_38 = arith.constant 0 : index
      %c0_39 = arith.constant 0 : index
      %48 = vector.load %arg7[%c0_38, %c0_39] : memref<32x32xf32, #tpu.memory_space<vmem>>, vector<32x32xf32>
      %cst_40 = arith.constant dense<0.000000e+00> : vector<8x32xf32>
      %49 = tpu.matmul %43, %48, %cst_40 {dimension_numbers = #tpu.dot_dimension_numbers<[1], [0], [0], [1], [0, 0, 1, 1], [], []>} : vector<8x32xf32>, vector<32x32xf32>, vector<8x32xf32> -> vector<8x32xf32>
      %c0_41 = arith.constant 0 : index
      %c0_42 = arith.constant 0 : index
      %50 = vector.load %arg10[%c0_41, %c0_42] : memref<1x32xf32, #tpu.memory_space<vmem>>, vector<1x32xf32>
      %51 = vector.broadcast %50 : vector<1x32xf32> to vector<8x32xf32>
      %52 = arith.addf %49, %51 : vector<8x32xf32>
      %cst_43 = arith.constant 5.000000e-01 : f32
      %53 = vector.broadcast %cst_43 : f32 to vector<8x32xf32>
      %54 = arith.mulf %52, %53 : vector<8x32xf32>
      %c0_44 = arith.constant 0 : index
      %c0_45 = arith.constant 0 : index
      %55 = vector.load %arg8[%c0_44, %c0_45] : memref<32x32xf32, #tpu.memory_space<vmem>>, vector<32x32xf32>
      %cst_46 = arith.constant dense<0.000000e+00> : vector<8x32xf32>
      %56 = tpu.matmul %45, %55, %cst_46 {dimension_numbers = #tpu.dot_dimension_numbers<[1], [0], [0], [1], [0, 0, 1, 1], [], []>} : vector<8x32xf32>, vector<32x32xf32>, vector<8x32xf32> -> vector<8x32xf32>
      %c0_47 = arith.constant 0 : index
      %c0_48 = arith.constant 0 : index
      %57 = vector.load %arg11[%c0_47, %c0_48] : memref<1x32xf32, #tpu.memory_space<vmem>>, vector<1x32xf32>
      %58 = vector.broadcast %57 : vector<1x32xf32> to vector<8x32xf32>
      %59 = arith.addf %56, %58 : vector<8x32xf32>
      %c0_49 = arith.constant 0 : index
      %c0_50 = arith.constant 0 : index
      %60 = vector.load %arg9[%c0_49, %c0_50] : memref<32x32xf32, #tpu.memory_space<vmem>>, vector<32x32xf32>
      %cst_51 = arith.constant dense<0.000000e+00> : vector<8x32xf32>
      %61 = tpu.matmul %47, %60, %cst_51 {dimension_numbers = #tpu.dot_dimension_numbers<[1], [0], [0], [1], [0, 0, 1, 1], [], []>} : vector<8x32xf32>, vector<32x32xf32>, vector<8x32xf32> -> vector<8x32xf32>
      %c0_52 = arith.constant 0 : index
      %c0_53 = arith.constant 0 : index
      %62 = vector.load %arg12[%c0_52, %c0_53] : memref<1x32xf32, #tpu.memory_space<vmem>>, vector<1x32xf32>
      %63 = vector.broadcast %62 : vector<1x32xf32> to vector<8x32xf32>
      %64 = arith.addf %61, %63 : vector<8x32xf32>
      %65 = vector.extract_strided_slice %54 {offsets = [0, 0], sizes = [8, 4], strides = [1, 1]} : vector<8x32xf32> to vector<8x4xf32>
      %66 = arith.truncf %65 : vector<8x4xf32> to vector<8x4xbf16>
      %c0_54 = arith.constant 0 : index
      %c0_55 = arith.constant 0 : index
      %c0_56 = arith.constant 0 : index
      %67 = vector.load %arg17[%c0_54, %c0_55, %c0_56] : memref<8x8x4xbf16, #tpu.memory_space<vmem>>, vector<1x8x4xbf16>
      %68 = vector.shape_cast %67 : vector<1x8x4xbf16> to vector<8x4xbf16>
      %69 = vector.shape_cast %66 : vector<8x4xbf16> to vector<1x8x4xbf16>
      tpu.vector_store %arg17[%c0_54, %c0_55, %c0_56], %69 {strides = array<i32>} : memref<8x8x4xbf16, #tpu.memory_space<vmem>>, vector<1x8x4xbf16>,
      %70 = vector.extract_strided_slice %59 {offsets = [0, 0], sizes = [8, 4], strides = [1, 1]} : vector<8x32xf32> to vector<8x4xf32>
      %71 = arith.truncf %70 : vector<8x4xf32> to vector<8x4xbf16>
      %c0_57 = arith.constant 0 : index
      %c0_58 = arith.constant 0 : index
      %c0_59 = arith.constant 0 : index
      %72 = vector.load %arg18[%c0_57, %c0_58, %c0_59] : memref<8x8x4xbf16, #tpu.memory_space<vmem>>, vector<1x8x4xbf16>
      %73 = vector.shape_cast %72 : vector<1x8x4xbf16> to vector<8x4xbf16>
      %74 = vector.shape_cast %71 : vector<8x4xbf16> to vector<1x8x4xbf16>
      tpu.vector_store %arg18[%c0_57, %c0_58, %c0_59], %74 {strides = array<i32>} : memref<8x8x4xbf16, #tpu.memory_space<vmem>>, vector<1x8x4xbf16>,
      %75 = vector.extract_strided_slice %64 {offsets = [0, 0], sizes = [8, 4], strides = [1, 1]} : vector<8x32xf32> to vector<8x4xf32>
      %76 = arith.truncf %75 : vector<8x4xf32> to vector<8x4xbf16>
      %c0_60 = arith.constant 0 : index
      %c0_61 = arith.constant 0 : index
      %c0_62 = arith.constant 0 : index
      %77 = vector.load %arg19[%c0_60, %c0_61, %c0_62] : memref<8x8x4xbf16, #tpu.memory_space<vmem>>, vector<1x8x4xbf16>
      %78 = vector.shape_cast %77 : vector<1x8x4xbf16> to vector<8x4xbf16>
      %79 = vector.shape_cast %76 : vector<8x4xbf16> to vector<1x8x4xbf16>
      tpu.vector_store %arg19[%c0_60, %c0_61, %c0_62], %79 {strides = array<i32>} : memref<8x8x4xbf16, #tpu.memory_space<vmem>>, vector<1x8x4xbf16>,
      %80 = vector.extract_strided_slice %54 {offsets = [0, 4], sizes = [8, 4], strides = [1, 1]} : vector<8x32xf32> to vector<8x4xf32>
      %81 = arith.truncf %80 : vector<8x4xf32> to vector<8x4xbf16>
      %c1 = arith.constant 1 : index
      %c0_63 = arith.constant 0 : index
      %c0_64 = arith.constant 0 : index
      %82 = vector.load %arg17[%c1, %c0_63, %c0_64] : memref<8x8x4xbf16, #tpu.memory_space<vmem>>, vector<1x8x4xbf16>
      %83 = vector.shape_cast %82 : vector<1x8x4xbf16> to vector<8x4xbf16>
      %84 = vector.shape_cast %81 : vector<8x4xbf16> to vector<1x8x4xbf16>
      tpu.vector_store %arg17[%c1, %c0_63, %c0_64], %84 {strides = array<i32>} : memref<8x8x4xbf16, #tpu.memory_space<vmem>>, vector<1x8x4xbf16>,
      %85 = vector.extract_strided_slice %59 {offsets = [0, 4], sizes = [8, 4], strides = [1, 1]} : vector<8x32xf32> to vector<8x4xf32>
      %86 = arith.truncf %85 : vector<8x4xf32> to vector<8x4xbf16>
      %c1_65 = arith.constant 1 : index
      %c0_66 = arith.constant 0 : index
      %c0_67 = arith.constant 0 : index
      %87 = vector.load %arg18[%c1_65, %c0_66, %c0_67] : memref<8x8x4xbf16, #tpu.memory_space<vmem>>, vector<1x8x4xbf16>
      %88 = vector.shape_cast %87 : vector<1x8x4xbf16> to vector<8x4xbf16>
      %89 = vector.shape_cast %86 : vector<8x4xbf16> to vector<1x8x4xbf16>
      tpu.vector_store %arg18[%c1_65, %c0_66, %c0_67], %89 {strides = array<i32>} : memref<8x8x4xbf16, #tpu.memory_space<vmem>>, vector<1x8x4xbf16>,
      %90 = vector.extract_strided_slice %64 {offsets = [0, 4], sizes = [8, 4], strides = [1, 1]} : vector<8x32xf32> to vector<8x4xf32>
      %91 = arith.truncf %90 : vector<8x4xf32> to vector<8x4xbf16>
      %c1_68 = arith.constant 1 : index
      %c0_69 = arith.constant 0 : index
      %c0_70 = arith.constant 0 : index
      %92 = vector.load %arg19[%c1_68, %c0_69, %c0_70] : memref<8x8x4xbf16, #tpu.memory_space<vmem>>, vector<1x8x4xbf16>
      %93 = vector.shape_cast %92 : vector<1x8x4xbf16> to vector<8x4xbf16>
      %94 = vector.shape_cast %91 : vector<8x4xbf16> to vector<1x8x4xbf16>
      tpu.vector_store %arg19[%c1_68, %c0_69, %c0_70], %94 {strides = array<i32>} : memref<8x8x4xbf16, #tpu.memory_space<vmem>>, vector<1x8x4xbf16>,
      %95 = vector.extract_strided_slice %54 {offsets = [0, 8], sizes = [8, 4], strides = [1, 1]} : vector<8x32xf32> to vector<8x4xf32>
      %96 = arith.truncf %95 : vector<8x4xf32> to vector<8x4xbf16>
      %c2 = arith.constant 2 : index
      %c0_71 = arith.constant 0 : index
      %c0_72 = arith.constant 0 : index
      %97 = vector.load %arg17[%c2, %c0_71, %c0_72] : memref<8x8x4xbf16, #tpu.memory_space<vmem>>, vector<1x8x4xbf16>
      %98 = vector.shape_cast %97 : vector<1x8x4xbf16> to vector<8x4xbf16>
      %99 = vector.shape_cast %96 : vector<8x4xbf16> to vector<1x8x4xbf16>
      tpu.vector_store %arg17[%c2, %c0_71, %c0_72], %99 {strides = array<i32>} : memref<8x8x4xbf16, #tpu.memory_space<vmem>>, vector<1x8x4xbf16>,
      %100 = vector.extract_strided_slice %59 {offsets = [0, 8], sizes = [8, 4], strides = [1, 1]} : vector<8x32xf32> to vector<8x4xf32>
      %101 = arith.truncf %100 : vector<8x4xf32> to vector<8x4xbf16>
      %c2_73 = arith.constant 2 : index
      %c0_74 = arith.constant 0 : index
      %c0_75 = arith.constant 0 : index
      %102 = vector.load %arg18[%c2_73, %c0_74, %c0_75] : memref<8x8x4xbf16, #tpu.memory_space<vmem>>, vector<1x8x4xbf16>
      %103 = vector.shape_cast %102 : vector<1x8x4xbf16> to vector<8x4xbf16>
      %104 = vector.shape_cast %101 : vector<8x4xbf16> to vector<1x8x4xbf16>
      tpu.vector_store %arg18[%c2_73, %c0_74, %c0_75], %104 {strides = array<i32>} : memref<8x8x4xbf16, #tpu.memory_space<vmem>>, vector<1x8x4xbf16>,
      %105 = vector.extract_strided_slice %64 {offsets = [0, 8], sizes = [8, 4], strides = [1, 1]} : vector<8x32xf32> to vector<8x4xf32>
      %106 = arith.truncf %105 : vector<8x4xf32> to vector<8x4xbf16>
      %c2_76 = arith.constant 2 : index
      %c0_77 = arith.constant 0 : index
      %c0_78 = arith.constant 0 : index
      %107 = vector.load %arg19[%c2_76, %c0_77, %c0_78] : memref<8x8x4xbf16, #tpu.memory_space<vmem>>, vector<1x8x4xbf16>
      %108 = vector.shape_cast %107 : vector<1x8x4xbf16> to vector<8x4xbf16>
      %109 = vector.shape_cast %106 : vector<8x4xbf16> to vector<1x8x4xbf16>
      tpu.vector_store %arg19[%c2_76, %c0_77, %c0_78], %109 {strides = array<i32>} : memref<8x8x4xbf16, #tpu.memory_space<vmem>>, vector<1x8x4xbf16>,
      %110 = vector.extract_strided_slice %54 {offsets = [0, 12], sizes = [8, 4], strides = [1, 1]} : vector<8x32xf32> to vector<8x4xf32>
      %111 = arith.truncf %110 : vector<8x4xf32> to vector<8x4xbf16>
      %c3 = arith.constant 3 : index
      %c0_79 = arith.constant 0 : index
      %c0_80 = arith.constant 0 : index
      %112 = vector.load %arg17[%c3, %c0_79, %c0_80] : memref<8x8x4xbf16, #tpu.memory_space<vmem>>, vector<1x8x4xbf16>
      %113 = vector.shape_cast %112 : vector<1x8x4xbf16> to vector<8x4xbf16>
      %114 = vector.shape_cast %111 : vector<8x4xbf16> to vector<1x8x4xbf16>
      tpu.vector_store %arg17[%c3, %c0_79, %c0_80], %114 {strides = array<i32>} : memref<8x8x4xbf16, #tpu.memory_space<vmem>>, vector<1x8x4xbf16>,
      %115 = vector.extract_strided_slice %59 {offsets = [0, 12], sizes = [8, 4], strides = [1, 1]} : vector<8x32xf32> to vector<8x4xf32>
      %116 = arith.truncf %115 : vector<8x4xf32> to vector<8x4xbf16>
      %c3_81 = arith.constant 3 : index
      %c0_82 = arith.constant 0 : index
      %c0_83 = arith.constant 0 : index
      %117 = vector.load %arg18[%c3_81, %c0_82, %c0_83] : memref<8x8x4xbf16, #tpu.memory_space<vmem>>, vector<1x8x4xbf16>
      %118 = vector.shape_cast %117 : vector<1x8x4xbf16> to vector<8x4xbf16>
      %119 = vector.shape_cast %116 : vector<8x4xbf16> to vector<1x8x4xbf16>
      tpu.vector_store %arg18[%c3_81, %c0_82, %c0_83], %119 {strides = array<i32>} : memref<8x8x4xbf16, #tpu.memory_space<vmem>>, vector<1x8x4xbf16>,
      %120 = vector.extract_strided_slice %64 {offsets = [0, 12], sizes = [8, 4], strides = [1, 1]} : vector<8x32xf32> to vector<8x4xf32>
      %121 = arith.truncf %120 : vector<8x4xf32> to vector<8x4xbf16>
      %c3_84 = arith.constant 3 : index
      %c0_85 = arith.constant 0 : index
      %c0_86 = arith.constant 0 : index
      %122 = vector.load %arg19[%c3_84, %c0_85, %c0_86] : memref<8x8x4xbf16, #tpu.memory_space<vmem>>, vector<1x8x4xbf16>
      %123 = vector.shape_cast %122 : vector<1x8x4xbf16> to vector<8x4xbf16>
      %124 = vector.shape_cast %121 : vector<8x4xbf16> to vector<1x8x4xbf16>
      tpu.vector_store %arg19[%c3_84, %c0_85, %c0_86], %124 {strides = array<i32>} : memref<8x8x4xbf16, #tpu.memory_space<vmem>>, vector<1x8x4xbf16>,
      %125 = vector.extract_strided_slice %54 {offsets = [0, 16], sizes = [8, 4], strides = [1, 1]} : vector<8x32xf32> to vector<8x4xf32>
      %126 = arith.truncf %125 : vector<8x4xf32> to vector<8x4xbf16>
      %c4 = arith.constant 4 : index
      %c0_87 = arith.constant 0 : index
      %c0_88 = arith.constant 0 : index
      %127 = vector.load %arg17[%c4, %c0_87, %c0_88] : memref<8x8x4xbf16, #tpu.memory_space<vmem>>, vector<1x8x4xbf16>
      %128 = vector.shape_cast %127 : vector<1x8x4xbf16> to vector<8x4xbf16>
      %129 = vector.shape_cast %126 : vector<8x4xbf16> to vector<1x8x4xbf16>
      tpu.vector_store %arg17[%c4, %c0_87, %c0_88], %129 {strides = array<i32>} : memref<8x8x4xbf16, #tpu.memory_space<vmem>>, vector<1x8x4xbf16>,
      %130 = vector.extract_strided_slice %59 {offsets = [0, 16], sizes = [8, 4], strides = [1, 1]} : vector<8x32xf32> to vector<8x4xf32>
      %131 = arith.truncf %130 : vector<8x4xf32> to vector<8x4xbf16>
      %c4_89 = arith.constant 4 : index
      %c0_90 = arith.constant 0 : index
      %c0_91 = arith.constant 0 : index
      %132 = vector.load %arg18[%c4_89, %c0_90, %c0_91] : memref<8x8x4xbf16, #tpu.memory_space<vmem>>, vector<1x8x4xbf16>
      %133 = vector.shape_cast %132 : vector<1x8x4xbf16> to vector<8x4xbf16>
      %134 = vector.shape_cast %131 : vector<8x4xbf16> to vector<1x8x4xbf16>
      tpu.vector_store %arg18[%c4_89, %c0_90, %c0_91], %134 {strides = array<i32>} : memref<8x8x4xbf16, #tpu.memory_space<vmem>>, vector<1x8x4xbf16>,
      %135 = vector.extract_strided_slice %64 {offsets = [0, 16], sizes = [8, 4], strides = [1, 1]} : vector<8x32xf32> to vector<8x4xf32>
      %136 = arith.truncf %135 : vector<8x4xf32> to vector<8x4xbf16>
      %c4_92 = arith.constant 4 : index
      %c0_93 = arith.constant 0 : index
      %c0_94 = arith.constant 0 : index
      %137 = vector.load %arg19[%c4_92, %c0_93, %c0_94] : memref<8x8x4xbf16, #tpu.memory_space<vmem>>, vector<1x8x4xbf16>
      %138 = vector.shape_cast %137 : vector<1x8x4xbf16> to vector<8x4xbf16>
      %139 = vector.shape_cast %136 : vector<8x4xbf16> to vector<1x8x4xbf16>
      tpu.vector_store %arg19[%c4_92, %c0_93, %c0_94], %139 {strides = array<i32>} : memref<8x8x4xbf16, #tpu.memory_space<vmem>>, vector<1x8x4xbf16>,
      %140 = vector.extract_strided_slice %54 {offsets = [0, 20], sizes = [8, 4], strides = [1, 1]} : vector<8x32xf32> to vector<8x4xf32>
      %141 = arith.truncf %140 : vector<8x4xf32> to vector<8x4xbf16>
      %c5 = arith.constant 5 : index
      %c0_95 = arith.constant 0 : index
      %c0_96 = arith.constant 0 : index
      %142 = vector.load %arg17[%c5, %c0_95, %c0_96] : memref<8x8x4xbf16, #tpu.memory_space<vmem>>, vector<1x8x4xbf16>
      %143 = vector.shape_cast %142 : vector<1x8x4xbf16> to vector<8x4xbf16>
      %144 = vector.shape_cast %141 : vector<8x4xbf16> to vector<1x8x4xbf16>
      tpu.vector_store %arg17[%c5, %c0_95, %c0_96], %144 {strides = array<i32>} : memref<8x8x4xbf16, #tpu.memory_space<vmem>>, vector<1x8x4xbf16>,
      %145 = vector.extract_strided_slice %59 {offsets = [0, 20], sizes = [8, 4], strides = [1, 1]} : vector<8x32xf32> to vector<8x4xf32>
      %146 = arith.truncf %145 : vector<8x4xf32> to vector<8x4xbf16>
      %c5_97 = arith.constant 5 : index
      %c0_98 = arith.constant 0 : index
      %c0_99 = arith.constant 0 : index
      %147 = vector.load %arg18[%c5_97, %c0_98, %c0_99] : memref<8x8x4xbf16, #tpu.memory_space<vmem>>, vector<1x8x4xbf16>
      %148 = vector.shape_cast %147 : vector<1x8x4xbf16> to vector<8x4xbf16>
      %149 = vector.shape_cast %146 : vector<8x4xbf16> to vector<1x8x4xbf16>
      tpu.vector_store %arg18[%c5_97, %c0_98, %c0_99], %149 {strides = array<i32>} : memref<8x8x4xbf16, #tpu.memory_space<vmem>>, vector<1x8x4xbf16>,
      %150 = vector.extract_strided_slice %64 {offsets = [0, 20], sizes = [8, 4], strides = [1, 1]} : vector<8x32xf32> to vector<8x4xf32>
      %151 = arith.truncf %150 : vector<8x4xf32> to vector<8x4xbf16>
      %c5_100 = arith.constant 5 : index
      %c0_101 = arith.constant 0 : index
      %c0_102 = arith.constant 0 : index
      %152 = vector.load %arg19[%c5_100, %c0_101, %c0_102] : memref<8x8x4xbf16, #tpu.memory_space<vmem>>, vector<1x8x4xbf16>
      %153 = vector.shape_cast %152 : vector<1x8x4xbf16> to vector<8x4xbf16>
      %154 = vector.shape_cast %151 : vector<8x4xbf16> to vector<1x8x4xbf16>
      tpu.vector_store %arg19[%c5_100, %c0_101, %c0_102], %154 {strides = array<i32>} : memref<8x8x4xbf16, #tpu.memory_space<vmem>>, vector<1x8x4xbf16>,
      %155 = vector.extract_strided_slice %54 {offsets = [0, 24], sizes = [8, 4], strides = [1, 1]} : vector<8x32xf32> to vector<8x4xf32>
      %156 = arith.truncf %155 : vector<8x4xf32> to vector<8x4xbf16>
      %c6 = arith.constant 6 : index
      %c0_103 = arith.constant 0 : index
      %c0_104 = arith.constant 0 : index
      %157 = vector.load %arg17[%c6, %c0_103, %c0_104] : memref<8x8x4xbf16, #tpu.memory_space<vmem>>, vector<1x8x4xbf16>
      %158 = vector.shape_cast %157 : vector<1x8x4xbf16> to vector<8x4xbf16>
      %159 = vector.shape_cast %156 : vector<8x4xbf16> to vector<1x8x4xbf16>
      tpu.vector_store %arg17[%c6, %c0_103, %c0_104], %159 {strides = array<i32>} : memref<8x8x4xbf16, #tpu.memory_space<vmem>>, vector<1x8x4xbf16>,
      %160 = vector.extract_strided_slice %59 {offsets = [0, 24], sizes = [8, 4], strides = [1, 1]} : vector<8x32xf32> to vector<8x4xf32>
      %161 = arith.truncf %160 : vector<8x4xf32> to vector<8x4xbf16>
      %c6_105 = arith.constant 6 : index
      %c0_106 = arith.constant 0 : index
      %c0_107 = arith.constant 0 : index
      %162 = vector.load %arg18[%c6_105, %c0_106, %c0_107] : memref<8x8x4xbf16, #tpu.memory_space<vmem>>, vector<1x8x4xbf16>
      %163 = vector.shape_cast %162 : vector<1x8x4xbf16> to vector<8x4xbf16>
      %164 = vector.shape_cast %161 : vector<8x4xbf16> to vector<1x8x4xbf16>
      tpu.vector_store %arg18[%c6_105, %c0_106, %c0_107], %164 {strides = array<i32>} : memref<8x8x4xbf16, #tpu.memory_space<vmem>>, vector<1x8x4xbf16>,
      %165 = vector.extract_strided_slice %64 {offsets = [0, 24], sizes = [8, 4], strides = [1, 1]} : vector<8x32xf32> to vector<8x4xf32>
      %166 = arith.truncf %165 : vector<8x4xf32> to vector<8x4xbf16>
      %c6_108 = arith.constant 6 : index
      %c0_109 = arith.constant 0 : index
      %c0_110 = arith.constant 0 : index
      %167 = vector.load %arg19[%c6_108, %c0_109, %c0_110] : memref<8x8x4xbf16, #tpu.memory_space<vmem>>, vector<1x8x4xbf16>
      %168 = vector.shape_cast %167 : vector<1x8x4xbf16> to vector<8x4xbf16>
      %169 = vector.shape_cast %166 : vector<8x4xbf16> to vector<1x8x4xbf16>
      tpu.vector_store %arg19[%c6_108, %c0_109, %c0_110], %169 {strides = array<i32>} : memref<8x8x4xbf16, #tpu.memory_space<vmem>>, vector<1x8x4xbf16>,
      %170 = vector.extract_strided_slice %54 {offsets = [0, 28], sizes = [8, 4], strides = [1, 1]} : vector<8x32xf32> to vector<8x4xf32>
      %171 = arith.truncf %170 : vector<8x4xf32> to vector<8x4xbf16>
      %c7 = arith.constant 7 : index
      %c0_111 = arith.constant 0 : index
      %c0_112 = arith.constant 0 : index
      %172 = vector.load %arg17[%c7, %c0_111, %c0_112] : memref<8x8x4xbf16, #tpu.memory_space<vmem>>, vector<1x8x4xbf16>
      %173 = vector.shape_cast %172 : vector<1x8x4xbf16> to vector<8x4xbf16>
      %174 = vector.shape_cast %171 : vector<8x4xbf16> to vector<1x8x4xbf16>
      tpu.vector_store %arg17[%c7, %c0_111, %c0_112], %174 {strides = array<i32>} : memref<8x8x4xbf16, #tpu.memory_space<vmem>>, vector<1x8x4xbf16>,
      %175 = vector.extract_strided_slice %59 {offsets = [0, 28], sizes = [8, 4], strides = [1, 1]} : vector<8x32xf32> to vector<8x4xf32>
      %176 = arith.truncf %175 : vector<8x4xf32> to vector<8x4xbf16>
      %c7_113 = arith.constant 7 : index
      %c0_114 = arith.constant 0 : index
      %c0_115 = arith.constant 0 : index
      %177 = vector.load %arg18[%c7_113, %c0_114, %c0_115] : memref<8x8x4xbf16, #tpu.memory_space<vmem>>, vector<1x8x4xbf16>
      %178 = vector.shape_cast %177 : vector<1x8x4xbf16> to vector<8x4xbf16>
      %179 = vector.shape_cast %176 : vector<8x4xbf16> to vector<1x8x4xbf16>
      tpu.vector_store %arg18[%c7_113, %c0_114, %c0_115], %179 {strides = array<i32>} : memref<8x8x4xbf16, #tpu.memory_space<vmem>>, vector<1x8x4xbf16>,
      %180 = vector.extract_strided_slice %64 {offsets = [0, 28], sizes = [8, 4], strides = [1, 1]} : vector<8x32xf32> to vector<8x4xf32>
      %181 = arith.truncf %180 : vector<8x4xf32> to vector<8x4xbf16>
      %c7_116 = arith.constant 7 : index
      %c0_117 = arith.constant 0 : index
      %c0_118 = arith.constant 0 : index
      %182 = vector.load %arg19[%c7_116, %c0_117, %c0_118] : memref<8x8x4xbf16, #tpu.memory_space<vmem>>, vector<1x8x4xbf16>
      %183 = vector.shape_cast %182 : vector<1x8x4xbf16> to vector<8x4xbf16>
      %184 = vector.shape_cast %181 : vector<8x4xbf16> to vector<1x8x4xbf16>
      tpu.vector_store %arg19[%c7_116, %c0_117, %c0_118], %184 {strides = array<i32>} : memref<8x8x4xbf16, #tpu.memory_space<vmem>>, vector<1x8x4xbf16>,
    } else {
    }
    %3 = arith.index_cast %arg2 : i32 to index
    %c0 = arith.constant 0 : index
    %c0_1 = arith.constant 0 : index
    %4 = vector.load %arg17[%3, %c0, %c0_1] : memref<8x8x4xbf16, #tpu.memory_space<vmem>>, vector<1x8x4xbf16>
    %5 = vector.shape_cast %4 : vector<1x8x4xbf16> to vector<8x4xbf16>
    %6 = arith.index_cast %arg2 : i32 to index
    %c0_2 = arith.constant 0 : index
    %c0_3 = arith.constant 0 : index
    %7 = vector.load %arg18[%6, %c0_2, %c0_3] : memref<8x8x4xbf16, #tpu.memory_space<vmem>>, vector<1x8x4xbf16>
    %8 = vector.shape_cast %7 : vector<1x8x4xbf16> to vector<8x4xbf16>
    %9 = arith.index_cast %arg2 : i32 to index
    %c0_4 = arith.constant 0 : index
    %c0_5 = arith.constant 0 : index
    %10 = vector.load %arg19[%9, %c0_4, %c0_5] : memref<8x8x4xbf16, #tpu.memory_space<vmem>>, vector<1x8x4xbf16>
    %11 = vector.shape_cast %10 : vector<1x8x4xbf16> to vector<8x4xbf16>
    %cst = arith.constant dense<0.000000e+00> : vector<8x8xf32>
    %12 = tpu.matmul %5, %8, %cst {dimension_numbers = #tpu.dot_dimension_numbers<[1], [1], [0], [0], [0, 0, 1, 0], [], []>} : vector<8x4xbf16>, vector<8x4xbf16>, vector<8x8xf32> -> vector<8x8xf32>
    %c0_6 = arith.constant 0 : index
    %c0_7 = arith.constant 0 : index
    %c0_8 = arith.constant 0 : index
    %13 = vector.load %arg6[%c0_6, %c0_7, %c0_8] : memref<1x8x8xf32, #tpu.memory_space<vmem>>, vector<1x8x8xf32>
    %14 = vector.shape_cast %13 : vector<1x8x8xf32> to vector<8x8xf32>
    %15 = arith.addf %12, %14 : vector<8x8xf32>
    %cst_9 = arith.constant dense<0xFF800000> : vector<8xf32>
    %16 = vector.multi_reduction <maximumf>, %15, %cst_9 [1] : vector<8x8xf32> to vector<8xf32>
    %17 = vector.shape_cast %16 : vector<8xf32> to vector<8x1xf32>
    %18 = vector.broadcast %17 : vector<8x1xf32> to vector<8x8xf32>
    %19 = arith.subf %15, %18 : vector<8x8xf32>
    %20 = math.exp %19 : vector<8x8xf32>
    %cst_10 = arith.constant dense<0.000000e+00> : vector<8xf32>
    %21 = vector.multi_reduction <add>, %20, %cst_10 [1] : vector<8x8xf32> to vector<8xf32>
    %22 = vector.shape_cast %21 : vector<8xf32> to vector<8x1xf32>
    %cst_11 = arith.constant 1.000000e+00 : f32
    %23 = vector.broadcast %cst_11 : f32 to vector<8x1xf32>
    %24 = arith.divf %23, %22 : vector<8x1xf32>
    %25 = vector.broadcast %24 : vector<8x1xf32> to vector<8x8xf32>
    %26 = arith.mulf %20, %25 : vector<8x8xf32>
    %27 = arith.truncf %26 : vector<8x8xf32> to vector<8x8xbf16>
    %c0_12 = arith.constant 0 : index
    %c0_13 = arith.constant 0 : index
    %c0_14 = arith.constant 0 : index
    %c0_15 = arith.constant 0 : index
    %c0_16 = arith.constant 0 : index
    %28 = vector.load %arg16[%c0_12, %c0_13, %c0_14, %c0_15, %c0_16] : memref<1x1x1x8x8xbf16, #tpu.memory_space<vmem>>, vector<1x1x1x8x8xbf16>
    %29 = vector.shape_cast %28 : vector<1x1x1x8x8xbf16> to vector<8x8xbf16>
    %30 = vector.shape_cast %27 : vector<8x8xbf16> to vector<1x1x1x8x8xbf16>
    tpu.vector_store %arg16[%c0_12, %c0_13, %c0_14, %c0_15, %c0_16], %30 {strides = array<i32>} : memref<1x1x1x8x8xbf16, #tpu.memory_space<vmem>>, vector<1x1x1x8x8xbf16>,
    %31 = arith.truncf %26 : vector<8x8xf32> to vector<8x8xbf16>
    %cst_17 = arith.constant dense<0.000000e+00> : vector<8x4xf32>
    %32 = tpu.matmul %31, %11, %cst_17 {dimension_numbers = #tpu.dot_dimension_numbers<[1], [0], [0], [1], [0, 0, 1, 1], [], []>} : vector<8x8xbf16>, vector<8x4xbf16>, vector<8x4xf32> -> vector<8x4xf32>
    %c0_18 = arith.constant 0 : index
    %c0_19 = arith.constant 0 : index
    %c0_20 = arith.constant 0 : index
    %33 = vector.load %arg13[%c0_18, %c0_19, %c0_20] : memref<1x4x32xf32, #tpu.memory_space<vmem>>, vector<1x4x32xf32>
    %34 = vector.shape_cast %33 : vector<1x4x32xf32> to vector<4x32xf32>
    %cst_21 = arith.constant dense<0.000000e+00> : vector<8x32xf32>
    %35 = tpu.matmul %32, %34, %cst_21 {dimension_numbers = #tpu.dot_dimension_numbers<[1], [0], [0], [1], [0, 0, 1, 1], [], []>} : vector<8x4xf32>, vector<4x32xf32>, vector<8x32xf32> -> vector<8x32xf32>
    %c0_i32_22 = arith.constant 0 : i32
    %36 = arith.cmpi eq, %arg2, %c0_i32_22 : i32
    %37 = arith.extui %36 : i1 to i32
    %c0_i32_23 = arith.constant 0 : i32
    %38 = arith.cmpi ne, %37, %c0_i32_23 : i32
    scf.if %38 {
      %c0_26 = arith.constant 0 : index
      %c0_27 = arith.constant 0 : index
      %42 = vector.load %arg14[%c0_26, %c0_27] : memref<1x32xf32, #tpu.memory_space<vmem>>, vector<1x32xf32>
      %43 = vector.broadcast %42 : vector<1x32xf32> to vector<8x32xf32>
      %44 = arith.addf %35, %43 : vector<8x32xf32>
      %c0_28 = arith.constant 0 : index
      %c0_29 = arith.constant 0 : index
      %c0_30 = arith.constant 0 : index
      %c0_31 = arith.constant 0 : index
      %45 = vector.load %arg15[%c0_28, %c0_29, %c0_30, %c0_31] : memref<1x1x8x32xf32, #tpu.memory_space<vmem>>, vector<1x1x8x32xf32>
      %46 = vector.shape_cast %45 : vector<1x1x8x32xf32> to vector<8x32xf32>
      %47 = vector.shape_cast %44 : vector<8x32xf32> to vector<1x1x8x32xf32>
      tpu.vector_store %arg15[%c0_28, %c0_29, %c0_30, %c0_31], %47 {strides = array<i32>} : memref<1x1x8x32xf32, #tpu.memory_space<vmem>>, vector<1x1x8x32xf32>,
    } else {
    }
    %c0_i32_24 = arith.constant 0 : i32
    %39 = arith.cmpi ne, %arg2, %c0_i32_24 : i32
    %40 = arith.extui %39 : i1 to i32
    %c0_i32_25 = arith.constant 0 : i32
    %41 = arith.cmpi ne, %40, %c0_i32_25 : i32
    scf.if %41 {
      %c0_26 = arith.constant 0 : index
      %c0_27 = arith.constant 0 : index
      %c0_28 = arith.constant 0 : index
      %c0_29 = arith.constant 0 : index
      %42 = vector.load %arg15[%c0_26, %c0_27, %c0_28, %c0_29] : memref<1x1x8x32xf32, #tpu.memory_space<vmem>>, vector<1x1x8x32xf32>
      %43 = vector.shape_cast %42 : vector<1x1x8x32xf32> to vector<8x32xf32>
      %44 = arith.addf %43, %35 : vector<8x32xf32>
      %c0_30 = arith.constant 0 : index
      %c0_31 = arith.constant 0 : index
      %c0_32 = arith.constant 0 : index
      %c0_33 = arith.constant 0 : index
      %45 = vector.load %arg15[%c0_30, %c0_31, %c0_32, %c0_33] : memref<1x1x8x32xf32, #tpu.memory_space<vmem>>, vector<1x1x8x32xf32>
      %46 = vector.shape_cast %45 : vector<1x1x8x32xf32> to vector<8x32xf32>
      %47 = vector.shape_cast %44 : vector<8x32xf32> to vector<1x1x8x32xf32>
      tpu.vector_store %arg15[%c0_30, %c0_31, %c0_32, %c0_33], %47 {strides = array<i32>} : memref<1x1x8x32xf32, #tpu.memory_space<vmem>>, vector<1x1x8x32xf32>,
    } else {
    }
    return
  }
  func.func @transform_0(%arg0: i32, %arg1: i32, %arg2: i32) -> (i32, i32, i32, i32) {
    %c0_i32 = arith.constant 0 : i32
    %c0_i32_0 = arith.constant 0 : i32
    %c0_i32_1 = arith.constant 0 : i32
    return %arg0, %arg1, %c0_i32, %c0_i32_0 : i32, i32, i32, i32
  }
  func.func @transform_1(%arg0: i32, %arg1: i32, %arg2: i32) -> (i32, i32, i32, i32) {
    %c0_i32 = arith.constant 0 : i32
    %c0_i32_0 = arith.constant 0 : i32
    %c0_i32_1 = arith.constant 0 : i32
    return %arg0, %arg1, %c0_i32, %c0_i32_0 : i32, i32, i32, i32
  }
  func.func @transform_2(%arg0: i32, %arg1: i32, %arg2: i32) -> (i32, i32, i32, i32) {
    %c0_i32 = arith.constant 0 : i32
    %c0_i32_0 = arith.constant 0 : i32
    %c0_i32_1 = arith.constant 0 : i32
    return %arg0, %arg1, %c0_i32, %c0_i32_0 : i32, i32, i32, i32
  }
  func.func @transform_3(%arg0: i32, %arg1: i32, %arg2: i32) -> (i32, i32, i32) {
    %c0_i32 = arith.constant 0 : i32
    %c0_i32_0 = arith.constant 0 : i32
    %c0_i32_1 = arith.constant 0 : i32
    return %arg0, %c0_i32, %c0_i32_0 : i32, i32, i32
  }
  func.func @transform_4(%arg0: i32, %arg1: i32, %arg2: i32) -> (i32, i32) {
    %c0_i32 = arith.constant 0 : i32
    %c0_i32_0 = arith.constant 0 : i32
    %c0_i32_1 = arith.constant 0 : i32
    return %c0_i32, %c0_i32_0 : i32, i32
  }
  func.func @transform_5(%arg0: i32, %arg1: i32, %arg2: i32) -> (i32, i32) {
    %c0_i32 = arith.constant 0 : i32
    %c0_i32_0 = arith.constant 0 : i32
    %c0_i32_1 = arith.constant 0 : i32
    return %c0_i32, %c0_i32_0 : i32, i32
  }
  func.func @transform_6(%arg0: i32, %arg1: i32, %arg2: i32) -> (i32, i32) {
    %c0_i32 = arith.constant 0 : i32
    %c0_i32_0 = arith.constant 0 : i32
    %c0_i32_1 = arith.constant 0 : i32
    return %c0_i32, %c0_i32_0 : i32, i32
  }
  func.func @transform_7(%arg0: i32, %arg1: i32, %arg2: i32) -> (i32, i32) {
    %c0_i32 = arith.constant 0 : i32
    %c0_i32_0 = arith.constant 0 : i32
    %c0_i32_1 = arith.constant 0 : i32
    return %c0_i32, %c0_i32_0 : i32, i32
  }
  func.func @transform_8(%arg0: i32, %arg1: i32, %arg2: i32) -> (i32, i32) {
    %c0_i32 = arith.constant 0 : i32
    %c0_i32_0 = arith.constant 0 : i32
    %c0_i32_1 = arith.constant 0 : i32
    return %c0_i32, %c0_i32_0 : i32, i32
  }
  func.func @transform_9(%arg0: i32, %arg1: i32, %arg2: i32) -> (i32, i32) {
    %c0_i32 = arith.constant 0 : i32
    %c0_i32_0 = arith.constant 0 : i32
    %c0_i32_1 = arith.constant 0 : i32
    return %c0_i32, %c0_i32_0 : i32, i32
  }
  func.func @transform_10(%arg0: i32, %arg1: i32, %arg2: i32) -> (i32, i32, i32) {
    %c0_i32 = arith.constant 0 : i32
    %c0_i32_0 = arith.constant 0 : i32
    %c0_i32_1 = arith.constant 0 : i32
    return %arg2, %c0_i32, %c0_i32_0 : i32, i32, i32
  }
  func.func @transform_11(%arg0: i32, %arg1: i32, %arg2: i32) -> (i32, i32) {
    %c0_i32 = arith.constant 0 : i32
    %c0_i32_0 = arith.constant 0 : i32
    %c0_i32_1 = arith.constant 0 : i32
    return %c0_i32, %c0_i32_0 : i32, i32
  }
  func.func @transform_12(%arg0: i32, %arg1: i32, %arg2: i32) -> (i32, i32, i32, i32) {
    %c0_i32 = arith.constant 0 : i32
    %c0_i32_0 = arith.constant 0 : i32
    %c0_i32_1 = arith.constant 0 : i32
    return %arg0, %arg1, %c0_i32, %c0_i32_0 : i32, i32, i32, i32
  }
  func.func @transform_13(%arg0: i32, %arg1: i32, %arg2: i32) -> (i32, i32, i32, i32, i32) {
    %c0_i32 = arith.constant 0 : i32
    %c0_i32_0 = arith.constant 0 : i32
    %c0_i32_1 = arith.constant 0 : i32
    return %arg2, %arg0, %arg1, %c0_i32, %c0_i32_0 : i32, i32, i32, i32, i32
  }
}

</mosaic_0001>

<bundles_post_ra>
// kernel: lsh_attention_forward.1
= control target key start
LH: loop header
LB: loop body
LE: loop exit
PB: predicated region body
PF: predicated region fallthrough
CT: control target
= control target key end

     0   :  { %s1777_s0 = inlined_call_operand.vmem [shape: f32[2,4,8,32], index: 0, kind: input, shape index: {}]   ;;  %s1778_s1 = inlined_call_operand.vmem [shape: f32[2,4,8,32], index: 1, kind: input, shape index: {}]   ;;  %s1779_s2 = inlined_call_operand.vmem [shape: f32[2,4,8,32], index: 2, kind: input, shape index: {}]   ;;  %s1780_s3 = inlined_call_operand.vmem [shape: f32[2,8,8], index: 3, kind: input, shape index: {}]   ;;  %s1781_s4 = inlined_call_operand.vmem [shape: f32[32,32], index: 4, kind: input, shape index: {}]   ;;  %s1782_s5 = inlined_call_operand.vmem [shape: f32[32,32], index: 5, kind: input, shape index: {}]   ;;  %s1783_s6 = inlined_call_operand.vmem [shape: f32[32,32], index: 6, kind: input, shape index: {}]   ;;  %s1784_s7 = inlined_call_operand.vmem [shape: f32[1,32], index: 7, kind: input, shape index: {}]   ;;  %s1785_s8 = inlined_call_operand.vmem [shape: f32[1,32], index: 8, kind: input, shape index: {}]   ;;  %s1786_s9 = inlined_call_operand.vmem [shape: f32[1,32], index: 9, kind: input, shape index: {}]   ;;  %s1787_s10 = inlined_call_operand.vmem [shape: f32[8,4,32], index: 10, kind: input, shape index: {}]   ;;  %s1788_s11 = inlined_call_operand.vmem [shape: f32[1,32], index: 11, kind: input, shape index: {}]   ;;  %s1789_s12 = inlined_call_operand.hbm [shape: f32[2,4,8,32], index: 12, kind: output, shape index: {0}]   ;;  %s1790_s13 = inlined_call_operand.vmem [shape: bf16[8,2,4,8,8], index: 13, kind: output, shape index: {1}]  }
   0x1   :  { %1808 = sst [smem:[#allocation24_spill]] %s1780_s3 }
   0x2   :  { %1809 = sst [smem:[#allocation25_spill]] %s1786_s9 }
   0x3   :  { %1810 = sst [smem:[#allocation26_spill]] %s1788_s11 }
   0x4   :  { %1811 = sst [smem:[#allocation27_spill]] %s1789_s12 }
   0x5   :  { %19 = vsyncpa [#allocation6], 0 }
   0x6   :  { %21 = vsyncpa [#allocation6 + $0x1], 0  ;;  %s1497_s25 = smov 0   ;;  %s1499_s26 = smov 0  }
   0x7   :  { %s1501_s27 = smov 0   ;;  %s1503_s28 = smov 0  }
   0x8   :  { %s1505_s29 = smov 0   ;;  %s1507_s30 = smov 0  }
   0x9   :  { %s1509_s14 = smov 0   ;;  %s1511_s15 = smov 0  }
   0xa   :  { %s1513_s16 = smov 0   ;;  %s1515_s17 = smov 0  }
   0xb LB: > { %1812 = sst [smem:[#allocation8_spill]] %s1382_s25  ;;  %s1171_s18 = sadd.s32 4294967295, %s1418_s17   ;;  %s1418_s17 = sphi %s1515_s17, %s27_s17   ;;  %s1414_s16 = sphi %s1513_s16, %s1853_s16   ;;  %s1410_s15 = sphi %s1511_s15, %s1852_s15   ;;  %s1406_s14 = sphi %s1509_s14, %s1851_s14   ;;  %s1402_s30 = sphi %s1507_s30, %s1850_s30   ;;  %s1398_s29 = sphi %s1505_s29, %s1849_s29   ;;  %s1394_s28 = sphi %s1503_s28, %s1848_s28   ;;  %s1390_s27 = sphi %s1501_s27, %s1847_s27   ;;  %s1386_s26 = sphi %s1499_s26, %s1846_s26   ;;  %s1382_s25 = sphi %s1497_s25, %s1845_s25  }
   0xc   : > { %1813 = sst [smem:[#allocation9_spill]] %s1386_s26  ;;  %s1172_s19 = sadd.s32 4294967294, %s1418_s17  }
   0xd   : > { %1814 = sst [smem:[#allocation10_spill]] %s1390_s27  ;;  %s39_s20 = sadd.s32 1, %s1406_s14 }
   0xe   : > { %1815 = sst [smem:[#allocation11_spill]] %s1398_s29  ;;  %p40_p0 = scmp.ge.s32.totalorder %s39_s20, 8 }
   0xf   : > { %1816 = sst [smem:[#allocation12_spill]] %s1402_s30  ;;  %s42_s21 = sadd.s32 1, %s1410_s15 }
  0x10   : > { %1817 = sst [smem:[#allocation13_spill]] %s1406_s14  ;;  %s46_s22 = sadd.s32 1, %s1414_s16 }
  0x11   : > { %1818 = sst [smem:[#allocation14_spill]] %s1410_s15  ;;  %p348_p1 = scmp.ne.s32.totalorder %s1390_s27, %s1386_s26 }
  0x12   : > { %1819 = sst [smem:[#allocation15_spill]] %s1414_s16  ;;  %s1855_s20 = smov (%p40_p0, %s39_s20), 0 }
  0x13   : > { %1820 = sst [smem:[#allocation16_spill]] %s1418_s17  ;;  %s1857_s21 = smov (!%p40_p0, %s42_s21), %s1410_s15 }
  0x14   : > { %1821 = sst [smem:[#allocation17_spill]] %s1855_s20  ;;  %p349_p2 = scmp.eq.s32.totalorder %s1171_s18, 63 }
  0x15   : > { %p354_p3 = scmp.ne.s32.totalorder %s1386_s26, %s1382_s25  ;;  %p44_p4 = scmp.ge.s32.totalorder %s1857_s21, 4 }
  0x16   : > { %p355_p5 = scmp.eq.s32.totalorder %s1172_s19, 63  ;;  %p1559_p6 = por %p349_p2, %p348_p1 }
  0x17   : > { %s1859_s21 = smov (%p44_p4, %s1857_s21), 0  ;;  %s1861_s22 = smov (!%p44_p4, %s46_s22), %s1414_s16 }
  0x18   : > { %s1822_s23 = scalar_select %p1559_p6, 1, 0 }
  0x19   : > { %1824 = sst [smem:[#allocation19_spill]] %s1859_s21  ;;  %p1566_p7 = por %p355_p5, %p354_p3 }
  0x1a   : > { %1823 = sst [smem:[#allocation18_spill]] %s1822_s23  ;;  %p1175_p8 = scmp.ge.s32.totalorder %s1418_s17, 1 }
  0x1b   : > { %s1825_s24 = scalar_select %p1566_p7, 1, 0 }
  0x1c   : > { %p48_p9 = scmp.ge.s32.totalorder %s1861_s22, 2  ;;  %p471_p10 = scmp.lt.s32.totalorder %s1418_s17, 65 }
  0x1d   : > { %1826 = sst [smem:[#allocation20_spill]] %s1825_s24  ;;  %s334_s18 = ssub.s32 %s1410_s15, %s1859_s21 }
  0x1e   : > { %s1863_s22 = smov (%p48_p9, %s1861_s22), 0  ;;  %p472_p11 = pnand %p1175_p8, %p471_p10 }
  0x1f   : > { %1827 = sst [smem:[#allocation21_spill]] %s1863_s22  ;;  %s333_s19 = ssub.s32 %s1414_s16, %s1863_s22 }
  0x20   : > { %s335_s20 = sor.u32 %s334_s18, %s333_s19  ;;  %s338_s14 = sadd.s32 1, %s1390_s27 }
  0x21   : > { %p336_p12 = scmp.eq.s32.totalorder %s335_s20, 0  ;;  %475 = sbr.rel (%p472_p11) target bundleno = 1061 (0x425), region = 68 }
  0x23   : > { %s1580_s25 = scalar_select %p336_p12, %s1390_s27, %s338_s14  }
  0x25   : > { %1828 = sst [smem:[#allocation22_spill]] %s1580_s25 }
  0x26   : > { %s1802_s21 = sand.u32 1, %s1386_s26   ;;  %p554_p13 = scmp.lt.s32.totalorder %s1402_s30, 1 }
  0x27   : > { %s1176_s15 = sshll.u32 %s1802_s21, 3  ;;  %p556_p0 = scmp.lt.s32.totalorder %s1398_s29, 3 }
  0x28   : > { %p582_p1 = scmp.lt.s32.totalorder %s1394_s28, 7  ;;  %s1829_s3 = sld [smem:[#allocation24_spill]] }
  0x29   : > { %s555_s18 = scalar_select %p554_p13, %s1402_s30, 1 }
  0x2a   : > { %s557_s19 = scalar_select %p556_p0, %s1398_s29, 3 }
  0x2b   : > { %s1177_s20 = sshll.u32 %s555_s18, 2  ;;  %s1183_s14 = sshll.u32 %s555_s18, 3 }
  0x2c   : > { %s559_s22 = sadd.s32 %s1177_s20, %s557_s19  ;;  %s1620_s26 = scalar_lea.vmem [#allocation5], %s1176_s15 }
  0x2d   : > { %s1595_s24 = sshll.u32 %s559_s22, 3  ;;  %p1188_p2 = scmp.ne.s32.totalorder %s1394_s28, 0 }
  0x2e   : > { %s1593_s27 = scalar_lea.vmem %s1829_s3, %s1183_s14  ;;  %s569_s29 = scalar_lea.vmem %s1778_s1, %s1595_s24 }
  0x2f   : > { %1830 = sst [smem:[#allocation23_spill]] %s1593_s27  ;;  %s577_s20 = scalar_lea.vmem %s1779_s2, %s1595_s24 }
  0x30   : > { %s583_s25 = scalar_select %p582_p1, %s1394_s28, 7 }
  0x31   : > { %602 = sbr.rel (%p1188_p2) target bundleno = 357 (0x165), region = 72  ;;  %s1420_s19 = smov (!%p1188_p2), 116  }
  0x32   : > { %s1184_s16 = sshll.u32 %s583_s25, 2  ;;  %s1186_s14 = sshll.u32 %s583_s25, 3 }
  0x33   : > { %s1613_s11 = scalar_lea.vmem %s1787_s10, %s1184_s16  ;;  %s595_s12 = sadd.s32 %s1186_s14, %s559_s22 }
  0x34   : > { %s1187_s17 = sshll.u32 %s595_s12, 2  ;;  %s1832_s22 = sld [smem:[#allocation25_spill]] (!%p1188_p2) }
  0x35   : > { %s1618_s9 = scalar_lea.vmem %s1790_s13, %s1187_s17  ;;  %s1831_s17 = scalar_lea.vmem (!%p1188_p2), %s1777_s0, %s1595_s24 }
  0x36   : > { %v642_v0 = vld [vmem:[%s1782_s5 + $0x18] sm:$0xff]  ;;  %v641_v1 = vld [vmem:[%s1782_s5 + $0x10] sm:$0xff]  ;;  %v640_v5 = vld [vmem:[%s1782_s5 + $0x8] sm:$0xff]  ;;  %vm614_vm0 = vcmask 261120   ;;  %vm702_vm1 = vcmask 27648   ;;  %s1421_s27 = smov 120  }
  0x37   : > { %v673_v2 = vld [vmem:[%s1783_s6 + $0x18] sm:$0xff]  ;;  %662 = vmatpush.msra.mxu1 %v642_v0  ;;  %v672_v3 = vld [vmem:[%s1783_s6 + $0x10] sm:$0xff]  ;;  %v671_v6 = vld [vmem:[%s1783_s6 + $0x8] sm:$0xff]  ;;  %s1422_s15 = smov 124   ;;  %s1423_s21 = smov 112  }
  0x38   : > { %693 = vmatpush.msra.mxu2 %v673_v2  ;;  %v609_v4 = vld [vmem:[%s1781_s4 + $0x18] sm:$0xff]  ;;  %v639_v7 = vld [vmem:[%s1782_s5] sm:$0xff]  ;;  %v608_v8 = vld [vmem:[%s1781_s4 + $0x10] sm:$0xff]  ;;  %s1424_s25 = smov 108   ;;  %s1425_s16 = smov 104  }
  0x39   : > { %630 = vmatpush.msra.mxu0 %v609_v4  ;;  %663 = vmatpush.msra.mxu1 %v641_v1  ;;  %v604_v9 = vld [vmem:[%s569_s29] sm:$0xff]  ;;  %v607_v11 = vld [vmem:[%s1781_s4 + $0x8] sm:$0xff]  ;;  %s1426_s29 = smov 100  }
  0x3a   : > { %694 = vmatpush.msra.mxu2 %v672_v3  ;;  %v670_v10 = vld [vmem:[%s1783_s6] sm:$0xff] }
  0x3b   : > { %631 = vmatpush.msra.mxu0 %v608_v8  ;;  %664 = vmatpush.msra.mxu1 %v640_v5  ;;  %v605_v12 = vld [vmem:[%s577_s20] sm:$0xff] }
  0x3c   : > { %695 = vmatpush.msra.mxu2 %v671_v6  ;;  %v606_v13 = vld [vmem:[%s1781_s4] sm:$0xff] }
  0x3d   : > { %632 = vmatpush.msra.mxu0 %v607_v11  ;;  %665 = vmatpush.msra.mxu1 %v639_v7  ;;  %v603_v14 = vld [vmem:[%s1831_s17] sm:$0xff] }
  0x3e   : > { %696 = vmatpush.msra.mxu2 %v670_v10  ;;  %1190 = vmatmul.msk.f32.vlgmr.msra.gmra.mxu1 %vm614_vm0, %v604_v9  ;;  %v1300_v15 = vld [vmem:[%s1785_s8] ss:$0 sm:$0xff] }
  0x3f   : > { %1191 = vmatmul.msk.f32.vlgmr.msra.gmra.mxu2 %vm614_vm0, %v605_v12  ;;  %633 = vmatpush.msra.mxu0 %v606_v13  ;;  %v1301_v16 = vld [vmem:[%s1784_s7] ss:$0 sm:$0xff] }
  0x40   : > { %1189 = vmatmul.msk.f32.vlgmr.msra.gmra.mxu0 %vm614_vm0, %v603_v14  ;;  %v1302_v22 = vld [vmem:[%s1832_s22] ss:$0 sm:$0xff] }
  0xbb   : > { %v667_v17 = vpop.f32.mrf.mxu1 }
  0xbc   : > { %v668_v18 = vadd.f32 %v1300_v15, %v667_v17 }
  0xbd   : > { %v635_v19 = vpop.f32.mrf.mxu0 }
  0xbe   : > { %v704_v20 = vpack.c.bf16 %v668_v18, %v668_v18  ;;  %v636_v21 = vadd.f32 %v1301_v16, %v635_v19 }
  0xc0   : > { %705 = vst.msk [vmem:[#allocation3] sm:$0xf] %vm702_vm1, %v704_v20  ;;  %746 = vrot.lane.b32.xlu1 %v704_v20, %s1420_s19  ;;  %731 = vrot.lane.b32.xlu2 %v704_v20, %s1421_s27  ;;  %v638_v23 = vmul.f32 0.5, %v636_v21 }
  0xc1   : > { %715 = vrot.lane.b32.xlu0 %v704_v20, %s1422_s15 }
  0xc2   : > { %v698_v24 = vpop.f32.mrf.mxu2  ;;  %v701_v25 = vpack.c.bf16 %v638_v23, %v638_v23 }
  0xc3   : > { %v699_v26 = vadd.f32 %v1302_v22, %v698_v24 }
  0xc4   : > { %703 = vst.msk [vmem:[#allocation2] sm:$0xf] %vm702_vm1, %v701_v25 }
  0xc5   : > { %v706_v27 = vpack.c.bf16 %v699_v26, %v699_v26 }
  0xc7   : > { %707 = vst.msk [vmem:[#allocation4] sm:$0xf] %vm702_vm1, %v706_v27 }
  0xc8   : > { %761 = vrot.lane.b32.xlu1 %v704_v20, %s1423_s21  ;;  %736 = vrot.lane.b32.xlu2 %v706_v27, %s1421_s27 }
  0xc9   : > { %709 = vrot.lane.b32.xlu0 %v701_v25, %s1422_s15 }
  0xd0   : > { %776 = vrot.lane.b32.xlu1 %v704_v20, %s1424_s25  ;;  %751 = vrot.lane.b32.xlu2 %v706_v27, %s1420_s19 }
  0xd1   : > { %741 = vrot.lane.b32.xlu0 %v701_v25, %s1420_s19 }
  0xd8   : > { %791 = vrot.lane.b32.xlu1 %v704_v20, %s1425_s16  ;;  %766 = vrot.lane.b32.xlu2 %v706_v27, %s1423_s21 }
  0xd9   : > { %756 = vrot.lane.b32.xlu0 %v701_v25, %s1423_s21 }
  0xe0   : > { %781 = vrot.lane.b32.xlu2 %v706_v27, %s1424_s25  ;;  %726 = vrot.lane.b32.xlu1 %v701_v25, %s1421_s27 }
  0xe1   : > { %771 = vrot.lane.b32.xlu0 %v701_v25, %s1424_s25 }
  0xe8   : > { %796 = vrot.lane.b32.xlu2 %v706_v27, %s1425_s16  ;;  %721 = vrot.lane.b32.xlu1 %v706_v27, %s1422_s15 }
  0xe9   : > { %786 = vrot.lane.b32.xlu0 %v701_v25, %s1425_s16 }
  0xf0   : > { %811 = vrot.lane.b32.xlu2 %v706_v27, %s1426_s29  ;;  %806 = vrot.lane.b32.xlu1 %v704_v20, %s1426_s29 }
  0xf1   : > { %801 = vrot.lane.b32.xlu0 %v701_v25, %s1426_s29 }
 0x11a   : > { %v732_v28 = vpop.permute.xlu2 %731 }
 0x11b   : > { %735 = vst.msk [vmem:[#allocation3 + $0x8] sm:$0xf] %vm702_vm1, %v732_v28 }
 0x122   : > { %v737_v29 = vpop.permute.xlu2 %736 }
 0x123   : > { %740 = vst.msk [vmem:[#allocation4 + $0x8] sm:$0xf] %vm702_vm1, %v737_v29 }
 0x12a   : > { %v752_v30 = vpop.permute.xlu2 %751 }
 0x12b   : > { %755 = vst.msk [vmem:[#allocation4 + $0xc] sm:$0xf] %vm702_vm1, %v752_v30 }
 0x132   : > { %v747_v31 = vpop.permute.xlu1 %746  ;;  %v767_v32 = vpop.permute.xlu2 %766 }
 0x133   : > { %750 = vst.msk [vmem:[#allocation3 + $0xc] sm:$0xf] %vm702_vm1, %v747_v31  ;;  %v716_v33 = vpop.permute.xlu0 %715 }
 0x134   : > { %770 = vst.msk [vmem:[#allocation4 + $0x10] sm:$0xf] %vm702_vm1, %v767_v32 }
 0x135   : > { %719 = vst.msk [vmem:[#allocation3 + $0x4] sm:$0xf] %vm702_vm1, %v716_v33 }
 0x13a   : > { %v762_v34 = vpop.permute.xlu1 %761  ;;  %v782_v35 = vpop.permute.xlu2 %781 }
 0x13b   : > { %765 = vst.msk [vmem:[#allocation3 + $0x10] sm:$0xf] %vm702_vm1, %v762_v34  ;;  %v710_v36 = vpop.permute.xlu0 %709 }
 0x13c   : > { %785 = vst.msk [vmem:[#allocation4 + $0x14] sm:$0xf] %vm702_vm1, %v782_v35 }
 0x13d   : > { %713 = vst.msk [vmem:[#allocation2 + $0x4] sm:$0xf] %vm702_vm1, %v710_v36 }
 0x142   : > { %v777_v37 = vpop.permute.xlu1 %776  ;;  %v797_v38 = vpop.permute.xlu2 %796 }
 0x143   : > { %780 = vst.msk [vmem:[#allocation3 + $0x14] sm:$0xf] %vm702_vm1, %v777_v37  ;;  %v742_v39 = vpop.permute.xlu0 %741 }
 0x144   : > { %800 = vst.msk [vmem:[#allocation4 + $0x18] sm:$0xf] %vm702_vm1, %v797_v38 }
 0x145   : > { %745 = vst.msk [vmem:[#allocation2 + $0xc] sm:$0xf] %vm702_vm1, %v742_v39 }
 0x14a   : > { %v792_v40 = vpop.permute.xlu1 %791  ;;  %v812_v41 = vpop.permute.xlu2 %811 }
 0x14b   : > { %795 = vst.msk [vmem:[#allocation3 + $0x18] sm:$0xf] %vm702_vm1, %v792_v40  ;;  %v757_v42 = vpop.permute.xlu0 %756 }
 0x14c   : > { %815 = vst.msk [vmem:[#allocation4 + $0x1c] sm:$0xf] %vm702_vm1, %v812_v41 }
 0x14d   : > { %760 = vst.msk [vmem:[#allocation2 + $0x10] sm:$0xf] %vm702_vm1, %v757_v42 }
 0x152   : > { %v727_v43 = vpop.permute.xlu1 %726 }
 0x153   : > { %730 = vst.msk [vmem:[#allocation2 + $0x8] sm:$0xf] %vm702_vm1, %v727_v43  ;;  %v772_v44 = vpop.permute.xlu0 %771 }
 0x154   : > { %775 = vst.msk [vmem:[#allocation2 + $0x14] sm:$0xf] %vm702_vm1, %v772_v44 }
 0x15a   : > { %v722_v45 = vpop.permute.xlu1 %721 }
 0x15b   : > { %725 = vst.msk [vmem:[#allocation4 + $0x4] sm:$0xf] %vm702_vm1, %v722_v45  ;;  %v787_v46 = vpop.permute.xlu0 %786 }
 0x15c   : > { %790 = vst.msk [vmem:[#allocation2 + $0x18] sm:$0xf] %vm702_vm1, %v787_v46 }
 0x162   : > { %v807_v47 = vpop.permute.xlu1 %806 }
 0x163   : > { %810 = vst.msk [vmem:[#allocation3 + $0x1c] sm:$0xf] %vm702_vm1, %v807_v47  ;;  %v802_v48 = vpop.permute.xlu0 %801 }
 0x164   : > { %805 = vst.msk [vmem:[#allocation2 + $0x1c] sm:$0xf] %vm702_vm1, %v802_v48 }
 0x165 PF: > { %s1833_s14 = sld [smem:[#allocation23_spill]]  ;;  %s1192_s12 = sshll.u32 %s1394_s28, 2  ;;  %vm826_vm2 = vcmask 31744   ;;  %vm846_vm3 = vcmask 64512   ;;  %vm878_vm4 = vcmask 1043456   ;;  %vm873_vm9 = vcmask 60416  }
 0x166   : > { %s820_s17 = scalar_lea.vmem [#allocation3], %s1192_s12  ;;  %s817_s23 = scalar_lea.vmem [#allocation2], %s1192_s12  ;;  %v895_v13 = vld [vmem:[%s1613_s11] sm:$0xf] }
 0x167   : > { %s823_s18 = scalar_lea.vmem [#allocation4], %s1192_s12  ;;  %1197 = vmatpush.msk.msra.mxu2 %vm878_vm4, %v895_v13  ;;  %s1834_s24 = sld [smem:[#allocation26_spill]] (!%p1188_p2) }
 0x168   : > { %v824_v62 = vld [vmem:[%s823_s18] sm:$0xf] }
 0x169   : > { %v880_v63 = vsel %vm878_vm4, %v824_v62, 0 }
 0x16a   : > { %v821_v49 = vld [vmem:[%s820_s17] sm:$0xf]  ;;  %889 = vmatpush.bf16.msra.mxu1 %v880_v63 }
 0x16b   : > { %v831_v50 = vsel %vm826_vm2, %v821_v49, 0  ;;  %v818_v51 = vld [vmem:[%s817_s23] sm:$0xf] }
 0x16c   : > { %840 = vmatpush.bf16.xpose.msra.mxu0 %v831_v50  ;;  %v825_v52 = vld [vmem:[%s1833_s14] sm:$0xff] }
 0x173   : > { %1195 = vmatmul.msk.bf16.vlgmr.msra.gmra.mxu0 %vm826_vm2, %v818_v51 }
 0x1f0   : > { %v842_v53 = vpop.f32.mrf.mxu0 }
 0x1f1   : > { %v843_v54 = vadd.f32 %v842_v53, %v825_v52 }
 0x1f3   : > { %v847_v55 = vsel %vm846_vm3, %v843_v54, -inf }
 0x1f4   : > { %848 = vmax.xlane.f32.xlu0 %v847_v55 }
 0x1f8   : > { %v844_v56 = vpop.f32.mrf.mxu0 }
 0x267   : > { %v849_v57 = vpop.xlane.xlu0 %848 }
 0x268   : > { %v850_v58 = vsub.f32 %v843_v54, %v849_v57 }
 0x26a   : > { %v851_v59 = vmul.f32 1.442695, %v850_v58 }
 0x26c   : > { %1303 = vpow2.f32 %v851_v59 }
 0x272   : > { %v1304_v60 = vpop.eup %1303 }
 0x273   : > { %v853_v61 = vsel %vm846_vm3, %v1304_v60, 0.0 }
 0x274   : > { %854 = vadd.xlane.f32.xlu0 %v853_v61 }
 0x2e7   : > { %v855_v0 = vpop.xlane.xlu0 %854 }
 0x2e8   : > { %1305 = vrcp.f32 %v855_v0  ;;  %v867_v4 = vand.u32 2147483648, %v855_v0  ;;  %v865_v6 = vand.u32 2147483647, %v855_v0  ;;  %vm861_vm6 = vweird.f32 %v855_v0 }
 0x2ea   : > { %v868_v8 = vor.u32 1.1754944e-38, %v867_v4  ;;  %vm866_vm8 = vcmp.eq.f32.partialorder %v865_v6, 8.507059e+37 }
 0x2ee   : > { %v1306_v1 = vpop.eup %1305 }
 0x2ef   : > { %v857_v2 = vmul.f32 %v1306_v1, %v855_v0  ;;  %vm862_vm5 = vweird.f32 %v1306_v1 }
 0x2f0   : > { %vm863_vm7 = vmor %vm861_vm6, %vm862_vm5 }
 0x2f1   : > { %v858_v3 = vsub.f32 1.0, %v857_v2 }
 0x2f3   : > { %v859_v5 = vmul.f32 %v1306_v1, %v858_v3 }
 0x2f5   : > { %v860_v7 = vadd.f32 %v1306_v1, %v859_v5 }
 0x2f7   : > { %v864_v9 = vsel %vm863_vm7, %v1306_v1, %v860_v7 }
 0x2f8   : > { %v869_v10 = vsel %vm866_vm8, %v868_v8, %v864_v9 }
 0x2f9   : > { %v871_v11 = vmul.f32 %v1304_v60, %v869_v10 }
 0x2fb   : > { %v872_v12 = vpack.c.bf16 %v871_v11, %v871_v11 }
 0x2fd   : > { %874 = vst.msk [vmem:[%s1618_s9] sm:$0xf] %vm873_vm9, %v872_v12  ;;  %1196 = vmatmul.msk.bf16.vlgmr.msra.gmra.mxu1 %vm846_vm3, %v872_v12 }
 0x37a   : > { %v891_v14 = vpop.f32.mrf.mxu1 }
 0x37b   : > { %1198 = vmatmul.msk.f32.vlgmr.msra.gmra.mxu2 %vm826_vm2, %v891_v14 }
 0x382   : > { %v893_v15 = vpop.f32.mrf.mxu1 }
 0x3fa   : > { %924 = sbr.rel (%p1188_p2) target bundleno = 1027 (0x403), region = 76 }
 0x3fe   : > { %v919_v16 = vpop.f32.mrf.mxu2 }
 0x3ff   : > { %v1307_v17 = vld [vmem:[%s1834_s24] ss:$0 sm:$0xff]  ;;  %vm930_vm10 = vcmask 261120  }
 0x400   : > { %v929_v18 = vadd.f32 %v1307_v17, %v919_v16 }
 0x402   : > { %931 = vst.msk [vmem:[%s1620_s26] sm:$0xff] %vm930_vm10, %v929_v18 }
 0x403 PF: > { %p1200_p3 = scmp.eq.s32.totalorder %s1394_s28, 0 }
 0x405   : > { %935 = sbr.rel (%p1200_p3) target bundleno = 1038 (0x40e), region = 80 }
 0x40a   : > { %v936_v19 = vld [vmem:[%s1620_s26] sm:$0xff]  ;;  %vm938_vm11 = vcmask 261120  }
 0x40b   : > { %v937_v20 = vadd.f32 %v936_v19, %v919_v16 }
 0x40d   : > { %939 = vst.msk [vmem:[%s1620_s26] sm:$0xff] %vm938_vm11, %v937_v20 }
 0x40e PF: > { %s1835_s9 = sld [smem:[#allocation12_spill]]  ;;  %s967_s15 = sshll.u32 %s1620_s26, 4  ;;  %s968_s15 = int_to_ptr.vmem [resolvable:$true] %s967_s15 }
 0x40f   : > { %s1836_s11 = sld [smem:[#allocation11_spill]] }
 0x410   : > { %s1837_s30 = sld [smem:[#allocation9_spill]] }
 0x411   : > { %s1839_s28 = sld [smem:[#allocation27_spill]] }
 0x414   : > { %s1202_s19 = sshll.u32 %s1835_s9, 2 }
 0x415   : > { %s963_s27 = sadd.s32 %s1836_s11, %s1202_s19 }
 0x416   : > { %s1203_s21 = sshll.u32 %s963_s27, 3  ;;  %s1841_s17 = sand.u32 1, %s1837_s30  }
 0x417   : > { %s1840_s12 = smov %s1839_s28  ;;  %s965_s29 = scalar_lea.hbm %s1839_s28, %s1203_s21 }
 0x418   : > { %s969_s14 = sshll.u32 %s965_s29, 4  ;;  %s941_s23 = scalar_lea.sflag [#allocation6], %s1841_s17  ;;  %s970_s14 = int_to_ptr.hbm [resolvable:$true] %s969_s14 }
 0x419   : > { %s1322_s18 = sshra.s32 %s970_s14, 4  ;;  %s1328_s26 = scalar_lea.hbm %s1840_s12, 64  ;;  %s1323_s18 = int_to_ptr.hbm [resolvable:$true] %s1322_s18 }
 0x41a   : > { %s1324_s20 = scalar_lea.hbm %s1323_s18, 8  ;;  %p1329_p9 = scmp.lt.s32.totalorder %s1323_s18, %s1840_s12 }
 0x41b   : > { %p1325_p4 = scmp.ne.s32.totalorder %s1323_s18, %s1324_s20  ;;  %p1330_p10 = scmp.lt.s32.totalorder %s1328_s26, %s1324_s20 }
 0x41d   : > { %p1326_p5 = pnand %p1325_p4, %p1559_p6  ;;  %p1331_p11 = por %p1330_p10, %p1329_p9 }
 0x41f   : > { %p1327_p8 = pneg %p1326_p5 }
 0x421   : > { %p1332_p12 = pnand %p1331_p11, %p1327_p8 }
 0x423   : > { %1335 = shalt.err (!%p1332_p12)
}
 0x424   : > { %1206 = dma.vmem_to_hbm [thread:$0]  (%p1559_p6), %s968_s15, 128, %s970_s14, %s941_s23  }
 0x425 PF: > { %s1842_s30 = sld [smem:[#allocation16_spill]] }
 0x426   : > { %s1843_s19 = sld [smem:[#allocation8_spill]] }
 0x42b   : > { %p1212_p13 = scmp.ge.s32.totalorder %s1842_s30, 2 }
 0x42c   : > { %s984_s21 = sand.u32 1, %s1843_s19  }
 0x42d   : > { %p1209_p0 = pnand %p1212_p13, %p1566_p7  ;;  %s985_s25 = scalar_lea.sflag [#allocation6], %s984_s21 }
 0x42f   : > { %p1210_p1 = pneg %p1209_p0 }
 0x431   : > { %1377 = dma.done.wait (%p1210_p1), %s985_s25, 128  }
 0x432   : > { %1379 = vsyncadd (%p1210_p1), %s985_s25, 4294967168  ;;  %s27_s17 = sadd.s32 1, %s1842_s30   ;;  %s1845_s25 = sld [smem:[#allocation9_spill]] }
 0x433   : > { %p24_p2 = scmp.ge.s32.totalorder %s27_s17, 66   ;;  %s1846_s26 = sld [smem:[#allocation10_spill]] }
 0x434   : > { %s1847_s27 = sld [smem:[#allocation22_spill]] }
 0x435   : > { %s1848_s28 = sld [smem:[#allocation13_spill]] }
 0x436   : > { %s1849_s29 = sld [smem:[#allocation14_spill]]  ;;  %26 = sbr.rel (!%p24_p2) target bundleno = 11 (0xb), region = 163 }
 0x437   : > { %s1850_s30 = sld [smem:[#allocation15_spill]] }
 0x438   : > { %s1851_s14 = sld [smem:[#allocation17_spill]] }
 0x439   : > { %s1852_s15 = sld [smem:[#allocation19_spill]] }
 0x43a   : > { %s1853_s16 = sld [smem:[#allocation21_spill]] }
 0x43b   :  { %1006 = vsyncpa [#allocation6], 1 }
 0x43c   :  { %1008 = vsyncpa [#allocation6 + $0x1], 1 }

</bundles_post_ra>
